<compile_context>
chip_gen: v7x
topology: tpu7x:2x2x1
jax: 0.10.0
libtpu: 0.0.40
codegen_flags: <defaults>
</compile_context>

<pallas_src>
import functools

import jax
import jax.numpy as jnp
from jax import lax
from jax.experimental import pallas as pl
from jax.experimental.pallas import tpu as pltpu


def _round_up(x, m):
    return (x + m - 1) // m * m


def _cdiv(a, b):
    return (a + b - 1) // b


def _shared_actor_critic_kernel(x_ref, w1_ref, w2_ref, wh_ref,
                                b1_ref, b2_ref, bh_ref, out_ref, *,
                                action_dim):
    """One batch tile of the fused SharedActorCritic forward.

    x_ref   : (TB, S)    state tile (un-padded lane width S)
    w1_ref  : (S, Hp)    first shared layer
    w2_ref  : (Hp, Hp)   second shared layer
    wh_ref  : (Hp, Ap)   fused actor|critic head (zero-padded past A+1)
    b*_ref  : (1, Hp) / (1, Ap) biases (f32)
    out_ref : (TB, Ap)   lanes [0, A) = probs, lane A = value, rest = 0
    """
    cdt = w1_ref.dtype  # matmul operand dtype (f32 or bf16)

    x = x_ref[...]

    # shared MLP: Linear -> ReLU -> Linear -> ReLU.
    # Matmuls accumulate in f32; bias add / ReLU stay f32 (v5e-friendly).
    h = jnp.dot(x, w1_ref[...], preferred_element_type=jnp.float32)
    h = jnp.maximum(h + b1_ref[...], 0.0)
    h = jnp.dot(h.astype(cdt), w2_ref[...], preferred_element_type=jnp.float32)
    h = jnp.maximum(h + b2_ref[...], 0.0)

    # fused actor + critic head: lanes [0, A) = logits, lane A = value.
    head = jnp.dot(h.astype(cdt), wh_ref[...],
                   preferred_element_type=jnp.float32) + bh_ref[...]

    lane = lax.broadcasted_iota(jnp.int32, head.shape, 1)
    is_logit = lane < action_dim

    # masked softmax over the actor lanes only (all math in f32).
    masked = jnp.where(is_logit, head, jnp.float32(-1e30))
    m = jnp.max(masked, axis=-1, keepdims=True)
    e = jnp.exp(masked - m)                     # masked lanes underflow to 0
    denom = jnp.sum(e, axis=-1, keepdims=True)
    r = pl.reciprocal(denom, approx=True)       # EUP slot, effectively free
    r = r * (2.0 - denom * r)                   # one Newton step -> ~f32 exact
    probs = e * r

    # lane-dense combined output: probs | value | zeros (head pad lanes are 0
    # because the packed head weight/bias pad columns are 0).
    out_ref[...] = jnp.where(is_logit, probs, head)


def shared_actor_critic_forward(state, packed, action_dim, *, block_b=1024):
    """state: (B, S); packed = (w1, w2, w_head, b1, b2, b_head).

    Returns (probs (B, A), value (B, 1)) in float32.
    """
    w1, w2, wh, b1, b2, bh = packed
    B, S = state.shape
    Hp = w1.shape[1]
    Ap = wh.shape[1]

    in_dtype = w1.dtype                 # f32 or bf16 (matmul operand dtype)
    x = state.astype(in_dtype)

    # pad batch only to a sublane multiple (cheap; grid handles the rest).
    B8 = _round_up(max(B, 1), 8)
    if B8 != B:
        x = jnp.zeros((B8, S), in_dtype).at[:B].set(x)

    # batch tile: large (amortize ~0.35us/step), but keep >=2 grid steps for
    # big batches so v7x can shard the "parallel" axis across its 2 TCs.
    tb_cap = max(_round_up(_cdiv(B8, 2), 8), 8)
    TB = min(_round_up(block_b, 8), tb_cap)
    grid = (_cdiv(B8, TB),)

    kernel = functools.partial(_shared_actor_critic_kernel,
                               action_dim=action_dim)

    itm = jnp.dtype(in_dtype).itemsize
    cost = pl.CostEstimate(
        flops=2 * B8 * (S * Hp + Hp * Hp + Hp * Ap),
        transcendentals=B8 * Ap,
        bytes_accessed=(B8 * S * itm                       # state
                        + (S * Hp + Hp * Hp + Hp * Ap) * itm  # weights
                        + (2 * Hp + Ap) * 4                 # biases
                        + B8 * Ap * 4),                     # output
    )

    out = pl.pallas_call(
        kernel,
        out_shape=jax.ShapeDtypeStruct((B8, Ap), jnp.float32),
        grid_spec=pltpu.PrefetchScalarGridSpec(
            num_scalar_prefetch=0,
            grid=grid,
            in_specs=[
                pl.BlockSpec((TB, S), lambda i: (i, 0)),   # state tile
                pl.BlockSpec((S, Hp), lambda i: (0, 0)),   # w1 (resident)
                pl.BlockSpec((Hp, Hp), lambda i: (0, 0)),  # w2 (resident)
                pl.BlockSpec((Hp, Ap), lambda i: (0, 0)),  # w_head (resident)
                pl.BlockSpec((1, Hp), lambda i: (0, 0)),   # b1
                pl.BlockSpec((1, Hp), lambda i: (0, 0)),   # b2
                pl.BlockSpec((1, Ap), lambda i: (0, 0)),   # b_head
            ],
            out_specs=pl.BlockSpec((TB, Ap), lambda i: (i, 0)),
        ),
        compiler_params=pltpu.CompilerParams(
            dimension_semantics=("parallel",)),
        cost_estimate=cost,
    )(x, w1, w2, wh, b1, b2, bh)

    # single slice of the big slab, then split the small (B, A+1) array.
    out_small = out[:B, :action_dim + 1]
    probs = out_small[:, :action_dim]
    value = out_small[:, action_dim:action_dim + 1]
    return probs, value


def init_params(key, state_dim, action_dim, hidden_dim):
    """Deterministic synthetic init (PyTorch-Linear-style). Weights (in, out)."""
    ks = jax.random.split(key, 8)

    def lin(kw, kb, fan_in, fan_out):
        bound = 1.0 / jnp.sqrt(fan_in)
        w = jax.random.uniform(kw, (fan_in, fan_out), jnp.float32, -bound, bound)
        b = jax.random.uniform(kb, (1, fan_out), jnp.float32, -bound, bound)
        return w, b

    w1, b1 = lin(ks[0], ks[1], state_dim, hidden_dim)
    w2, b2 = lin(ks[2], ks[3], hidden_dim, hidden_dim)
    wa, ba = lin(ks[4], ks[5], hidden_dim, action_dim)
    wc, bc = lin(ks[6], ks[7], hidden_dim, 1)
    return dict(w1=w1, b1=b1, w2=w2, b2=b2, wa=wa, ba=ba, wc=wc, bc=bc)


def pack_params(params, state_dim, action_dim, hidden_dim,
                dtype=jnp.float32):
    """Per-layer packing (zero-padded). dtype=bfloat16 -> bf16 matmul path.

    Hp: hidden padded to a sublane multiple (use a 256-multiple if hidden_dim
    is ever scaled up, to fill the 256-wide v6e/v7x MXU).
    Ap: head output padded to a lane multiple so output stores are lane-dense.
    """
    Hp = _round_up(max(hidden_dim, 8), 8)
    Ap = _round_up(max(action_dim + 1, 128), 128)

    w1 = jnp.zeros((state_dim, Hp), dtype).at[:, :hidden_dim].set(
        params["w1"].astype(dtype))
    w2 = jnp.zeros((Hp, Hp), dtype).at[:hidden_dim, :hidden_dim].set(
        params["w2"].astype(dtype))
    wh = jnp.zeros((Hp, Ap), dtype)
    wh = wh.at[:hidden_dim, :action_dim].set(params["wa"].astype(dtype))
    wh = wh.at[:hidden_dim, action_dim:action_dim + 1].set(
        params["wc"].astype(dtype))

    # biases stay f32 (post-matmul math is f32 on every chip generation).
    b1 = jnp.zeros((1, Hp), jnp.float32).at[0, :hidden_dim].set(params["b1"][0])
    b2 = jnp.zeros((1, Hp), jnp.float32).at[0, :hidden_dim].set(params["b2"][0])
    bh = jnp.zeros((1, Ap), jnp.float32)
    bh = bh.at[0, :action_dim].set(params["ba"][0])
    bh = bh.at[0, action_dim:action_dim + 1].set(params["bc"][0])
    return (w1, w2, wh, b1, b2, bh)


def reference_forward(state, params):
    """Pure-JAX reference for correctness check."""
    h = jnp.maximum(state @ params["w1"] + params["b1"], 0.0)
    h = jnp.maximum(h @ params["w2"] + params["b2"], 0.0)
    logits = h @ params["wa"] + params["ba"]
    probs = jax.nn.softmax(logits, axis=-1)
    value = h @ params["wc"] + params["bc"]
    return probs, value


if __name__ == "__main__":
    key = jax.random.PRNGKey(0)
    k_params, k_state, k_big = jax.random.split(key, 3)

    B, STATE_DIM, ACTION_DIM, HIDDEN_DIM = 4, 8, 6, 32

    params = init_params(k_params, STATE_DIM, ACTION_DIM, HIDDEN_DIM)
    packed = pack_params(params, STATE_DIM, ACTION_DIM, HIDDEN_DIM)
    state = jax.random.normal(k_state, (B, STATE_DIM), jnp.float32)

    fwd = jax.jit(functools.partial(shared_actor_critic_forward,
                                    action_dim=ACTION_DIM))

    # small batch (exercises the batch->8 sublane pad path, grid = 1)
    probs, value = fwd(state, packed)
    jax.block_until_ready((probs, value))

    ref_probs, ref_value = reference_forward(state, params)
    assert probs.shape == (B, ACTION_DIM)
    assert value.shape == (B, 1)
    assert jnp.allclose(probs, ref_probs, atol=1e-5, rtol=1e-5)
    assert jnp.allclose(value, ref_value, atol=1e-5, rtol=1e-5)
    assert jnp.allclose(jnp.sum(probs, axis=-1), 1.0, atol=1e-5)

    # larger batch: 2-step "parallel" grid with a partial last block.
    BIG_B = 1000
    big_state = jax.random.normal(k_big, (BIG_B, STATE_DIM), jnp.float32)
    big_probs, big_value = fwd(big_state, packed)
    jax.block_until_ready((big_probs, big_value))
    ref_bp, ref_bv = reference_forward(big_state, params)
    assert big_probs.shape == (BIG_B, ACTION_DIM)
    assert big_value.shape == (BIG_B, 1)
    assert jnp.allclose(big_probs, ref_bp, atol=1e-4, rtol=1e-4)
    assert jnp.allclose(big_value, ref_bv, atol=1e-4, rtol=1e-4)
    assert jnp.allclose(jnp.sum(big_probs, axis=-1), 1.0, atol=1e-5)

    # optional bf16 matmul path (v6e/v7x native MXU dtype), relaxed tolerance.
    packed_bf16 = pack_params(params, STATE_DIM, ACTION_DIM, HIDDEN_DIM,
                              dtype=jnp.bfloat16)
    bf_probs, bf_value = fwd(state, packed_bf16)
    jax.block_until_ready((bf_probs, bf_value))
    assert bf_probs.shape == (B, ACTION_DIM)
    assert bf_value.shape == (B, 1)
    assert jnp.allclose(bf_probs, ref_probs, atol=5e-2, rtol=5e-2)
    assert jnp.allclose(bf_value, ref_value, atol=5e-2, rtol=5e-2)
    assert jnp.allclose(jnp.sum(bf_probs, axis=-1), 1.0, atol=1e-2)

    print("KERNEL_OK")
</pallas_src>

<mosaic_0001>
module attributes {stable_mosaic.version = 11 : i64} {
  func.func @_shared_actor_critic_kernel(%arg0: i32, %arg1: memref<8x8xf32, #tpu.memory_space<vmem>>, %arg2: memref<8x32xf32, #tpu.memory_space<vmem>>, %arg3: memref<32x32xf32, #tpu.memory_space<vmem>>, %arg4: memref<32x128xf32, #tpu.memory_space<vmem>>, %arg5: memref<1x32xf32, #tpu.memory_space<vmem>>, %arg6: memref<1x32xf32, #tpu.memory_space<vmem>>, %arg7: memref<1x128xf32, #tpu.memory_space<vmem>>, %arg8: memref<8x128xf32, #tpu.memory_space<vmem>>) attributes {dimension_semantics = [#tpu.dimension_semantics<parallel>], iteration_bounds = array<i64: 1>, scalar_prefetch = 0 : i64, scratch_operands = 0 : i64, tpu.core_type = #tpu.core_type<tc>, window_params = [{transform_indices = @transform_0, window_bounds = array<i64: 8, 8>}, {pipeline_mode = #tpu.pipeline_mode<synchronous>, transform_indices = @transform_1, window_bounds = array<i64: 8, 32>}, {pipeline_mode = #tpu.pipeline_mode<synchronous>, transform_indices = @transform_2, window_bounds = array<i64: 32, 32>}, {pipeline_mode = #tpu.pipeline_mode<synchronous>, transform_indices = @transform_3, window_bounds = array<i64: 32, 128>}, {pipeline_mode = #tpu.pipeline_mode<synchronous>, transform_indices = @transform_4, window_bounds = array<i64: 1, 32>}, {pipeline_mode = #tpu.pipeline_mode<synchronous>, transform_indices = @transform_5, window_bounds = array<i64: 1, 32>}, {pipeline_mode = #tpu.pipeline_mode<synchronous>, transform_indices = @transform_6, window_bounds = array<i64: 1, 128>}, {transform_indices = @transform_7, window_bounds = array<i64: 8, 128>}]} {
    %c0 = arith.constant 0 : index
    %c0_0 = arith.constant 0 : index
    %0 = vector.load %arg1[%c0, %c0_0] : memref<8x8xf32, #tpu.memory_space<vmem>>, vector<8x8xf32>
    %c0_1 = arith.constant 0 : index
    %c0_2 = arith.constant 0 : index
    %1 = vector.load %arg2[%c0_1, %c0_2] : memref<8x32xf32, #tpu.memory_space<vmem>>, vector<8x32xf32>
    %cst = arith.constant dense<0.000000e+00> : vector<8x32xf32>
    %2 = tpu.matmul %0, %1, %cst {dimension_numbers = #tpu.dot_dimension_numbers<[1], [0], [0], [1], [0, 0, 1, 1], [], []>} : vector<8x8xf32>, vector<8x32xf32>, vector<8x32xf32> -> vector<8x32xf32>
    %c0_3 = arith.constant 0 : index
    %c0_4 = arith.constant 0 : index
    %3 = vector.load %arg5[%c0_3, %c0_4] : memref<1x32xf32, #tpu.memory_space<vmem>>, vector<1x32xf32>
    %4 = vector.broadcast %3 : vector<1x32xf32> to vector<8x32xf32>
    %5 = arith.addf %2, %4 : vector<8x32xf32>
    %cst_5 = arith.constant 0.000000e+00 : f32
    %6 = vector.broadcast %cst_5 : f32 to vector<8x32xf32>
    %7 = arith.maximumf %5, %6 : vector<8x32xf32>
    %c0_6 = arith.constant 0 : index
    %c0_7 = arith.constant 0 : index
    %8 = vector.load %arg3[%c0_6, %c0_7] : memref<32x32xf32, #tpu.memory_space<vmem>>, vector<32x32xf32>
    %cst_8 = arith.constant dense<0.000000e+00> : vector<8x32xf32>
    %9 = tpu.matmul %7, %8, %cst_8 {dimension_numbers = #tpu.dot_dimension_numbers<[1], [0], [0], [1], [0, 0, 1, 1], [], []>} : vector<8x32xf32>, vector<32x32xf32>, vector<8x32xf32> -> vector<8x32xf32>
    %c0_9 = arith.constant 0 : index
    %c0_10 = arith.constant 0 : index
    %10 = vector.load %arg6[%c0_9, %c0_10] : memref<1x32xf32, #tpu.memory_space<vmem>>, vector<1x32xf32>
    %11 = vector.broadcast %10 : vector<1x32xf32> to vector<8x32xf32>
    %12 = arith.addf %9, %11 : vector<8x32xf32>
    %cst_11 = arith.constant 0.000000e+00 : f32
    %13 = vector.broadcast %cst_11 : f32 to vector<8x32xf32>
    %14 = arith.maximumf %12, %13 : vector<8x32xf32>
    %c0_12 = arith.constant 0 : index
    %c0_13 = arith.constant 0 : index
    %15 = vector.load %arg4[%c0_12, %c0_13] : memref<32x128xf32, #tpu.memory_space<vmem>>, vector<32x128xf32>
    %cst_14 = arith.constant dense<0.000000e+00> : vector<8x128xf32>
    %16 = tpu.matmul %14, %15, %cst_14 {dimension_numbers = #tpu.dot_dimension_numbers<[1], [0], [0], [1], [0, 0, 1, 1], [], []>} : vector<8x32xf32>, vector<32x128xf32>, vector<8x128xf32> -> vector<8x128xf32>
    %c0_15 = arith.constant 0 : index
    %c0_16 = arith.constant 0 : index
    %17 = vector.load %arg7[%c0_15, %c0_16] : memref<1x128xf32, #tpu.memory_space<vmem>>, vector<1x128xf32>
    %18 = vector.broadcast %17 : vector<1x128xf32> to vector<8x128xf32>
    %19 = arith.addf %16, %18 : vector<8x128xf32>
    %20 = tpu.iota {dimensions = array<i32: 1>} : vector<8x128xi32>
    %c6_i32 = arith.constant 6 : i32
    %21 = vector.broadcast %c6_i32 : i32 to vector<8x128xi32>
    %22 = arith.cmpi slt, %20, %21 : vector<8x128xi32>
    %cst_17 = arith.constant -1.000000e+30 : f32
    %23 = vector.broadcast %cst_17 : f32 to vector<8x128xf32>
    %24 = arith.select %22, %19, %23 : vector<8x128xi1>, vector<8x128xf32>
    %cst_18 = arith.constant dense<0xFF800000> : vector<8xf32>
    %25 = vector.multi_reduction <maximumf>, %24, %cst_18 [1] : vector<8x128xf32> to vector<8xf32>
    %26 = vector.shape_cast %25 : vector<8xf32> to vector<8x1xf32>
    %27 = vector.broadcast %26 : vector<8x1xf32> to vector<8x128xf32>
    %28 = arith.subf %24, %27 : vector<8x128xf32>
    %29 = math.exp %28 : vector<8x128xf32>
    %cst_19 = arith.constant dense<0.000000e+00> : vector<8xf32>
    %30 = vector.multi_reduction <add>, %29, %cst_19 [1] : vector<8x128xf32> to vector<8xf32>
    %31 = vector.shape_cast %30 : vector<8xf32> to vector<8x1xf32>
    %32 = tpu.reciprocal %31 {approx = true} : vector<8x1xf32> -> vector<8x1xf32>
    %33 = arith.mulf %31, %32 : vector<8x1xf32>
    %cst_20 = arith.constant 2.000000e+00 : f32
    %34 = vector.broadcast %cst_20 : f32 to vector<8x1xf32>
    %35 = arith.subf %34, %33 : vector<8x1xf32>
    %36 = arith.mulf %32, %35 : vector<8x1xf32>
    %37 = vector.broadcast %36 : vector<8x1xf32> to vector<8x128xf32>
    %38 = arith.mulf %29, %37 : vector<8x128xf32>
    %39 = arith.select %22, %38, %19 : vector<8x128xi1>, vector<8x128xf32>
    %c0_21 = arith.constant 0 : index
    %c0_22 = arith.constant 0 : index
    %40 = vector.load %arg8[%c0_21, %c0_22] : memref<8x128xf32, #tpu.memory_space<vmem>>, vector<8x128xf32>
    tpu.vector_store %arg8[%c0_21, %c0_22], %39 {strides = array<i32>} : memref<8x128xf32, #tpu.memory_space<vmem>>, vector<8x128xf32>,
    return
  }
  func.func @transform_0(%arg0: i32) -> (i32, i32) {
    %c0_i32 = arith.constant 0 : i32
    %c0_i32_0 = arith.constant 0 : i32
    return %arg0, %c0_i32 : i32, i32
  }
  func.func @transform_1(%arg0: i32) -> (i32, i32) {
    %c0_i32 = arith.constant 0 : i32
    %c0_i32_0 = arith.constant 0 : i32
    %c0_i32_1 = arith.constant 0 : i32
    return %c0_i32, %c0_i32_0 : i32, i32
  }
  func.func @transform_2(%arg0: i32) -> (i32, i32) {
    %c0_i32 = arith.constant 0 : i32
    %c0_i32_0 = arith.constant 0 : i32
    %c0_i32_1 = arith.constant 0 : i32
    return %c0_i32, %c0_i32_0 : i32, i32
  }
  func.func @transform_3(%arg0: i32) -> (i32, i32) {
    %c0_i32 = arith.constant 0 : i32
    %c0_i32_0 = arith.constant 0 : i32
    %c0_i32_1 = arith.constant 0 : i32
    return %c0_i32, %c0_i32_0 : i32, i32
  }
  func.func @transform_4(%arg0: i32) -> (i32, i32) {
    %c0_i32 = arith.constant 0 : i32
    %c0_i32_0 = arith.constant 0 : i32
    %c0_i32_1 = arith.constant 0 : i32
    return %c0_i32, %c0_i32_0 : i32, i32
  }
  func.func @transform_5(%arg0: i32) -> (i32, i32) {
    %c0_i32 = arith.constant 0 : i32
    %c0_i32_0 = arith.constant 0 : i32
    %c0_i32_1 = arith.constant 0 : i32
    return %c0_i32, %c0_i32_0 : i32, i32
  }
  func.func @transform_6(%arg0: i32) -> (i32, i32) {
    %c0_i32 = arith.constant 0 : i32
    %c0_i32_0 = arith.constant 0 : i32
    %c0_i32_1 = arith.constant 0 : i32
    return %c0_i32, %c0_i32_0 : i32, i32
  }
  func.func @transform_7(%arg0: i32) -> (i32, i32) {
    %c0_i32 = arith.constant 0 : i32
    %c0_i32_0 = arith.constant 0 : i32
    return %arg0, %c0_i32 : i32, i32
  }
}

</mosaic_0001>

<bundles_post_ra>
// kernel: shared_actor_critic_forward.1
= control target key start
LH: loop header
LB: loop body
LE: loop exit
PB: predicated region body
PF: predicated region fallthrough
CT: control target
= control target key end

     0   :  { %12 = vsyncpa [#allocation3], 0  ;;  %s539_s0 = inlined_call_operand.vmem [shape: f32[8,8], index: 0, kind: input, shape index: {}]   ;;  %s540_s1 = inlined_call_operand.vmem [shape: f32[8,32], index: 1, kind: input, shape index: {}]   ;;  %s541_s2 = inlined_call_operand.hbm [shape: f32[32,32], index: 2, kind: input, shape index: {}]   ;;  %s542_s3 = inlined_call_operand.hbm [shape: f32[32,128], index: 3, kind: input, shape index: {}]   ;;  %s543_s4 = inlined_call_operand.vmem [shape: f32[1,32], index: 4, kind: input, shape index: {}]   ;;  %s544_s5 = inlined_call_operand.vmem [shape: f32[1,32], index: 5, kind: input, shape index: {}]   ;;  %s545_s6 = inlined_call_operand.vmem [shape: f32[1,128], index: 6, kind: input, shape index: {}]   ;;  %s546_s7 = inlined_call_operand.vmem [shape: f32[8,128], index: 7, kind: output, shape index: {}]  }
   0x1   :  { %13 = vsyncpa [#allocation5], 0  ;;  %s448_s24 = smov [#allocation2]   ;;  %s400_s28 = scalar_lea.hbm %s541_s2, 512 }
   0x2   :  { %s23_s25 = sshll.u32 %s448_s24, 4  ;;  %p401_p0 = scmp.ne.s32.totalorder %s541_s2, %s400_s28  ;;  %s24_s25 = int_to_ptr.vmem [resolvable:$true] %s23_s25 }
   0x3   :  { %p404_p1 = scmp.lt.u32.totalorder %s400_s28, %s541_s2 }
   0x5   :  { %p406_p2 = pnand %p404_p1, %p401_p0 }
   0x7   :  { %409 = shalt.err (!%p406_p2)
}
   0x8   :  { %s410_s10 = scalar_lea.vmem %s24_s25, 512  ;;  %p415_p4 = scmp.lt.s32.totalorder %s24_s25, %s24_s25 }
   0x9   :  { %p411_p3 = scmp.ne.s32.totalorder %s24_s25, %s410_s10  ;;  %p416_p5 = scmp.lt.s32.totalorder %s410_s10, %s410_s10 }
   0xb   :  { %p417_p6 = por %p416_p5, %p415_p4 }
   0xd   :  { %p418_p7 = pnand %p417_p6, %p411_p3 }
   0xf   :  { %421 = shalt.err (!%p418_p7)
}
  0x10   :  { %s449_s11 = smov 128   ;;  %s450_s12 = smov 8  }
  0x11   :  { %29 = dma.hbm_to_vmem [thread:$0]  %s541_s2, 512, %s24_s25, [#allocation3], %s449_s11, %s449_s11, %s450_s12  }
  0x12   :  { %s451_s15 = smov [#allocation4]   ;;  %s422_s19 = scalar_lea.hbm %s542_s3, 512 }
  0x13   :  { %s35_s16 = sshll.u32 %s451_s15, 4  ;;  %p423_p8 = scmp.ne.s32.totalorder %s542_s3, %s422_s19  ;;  %s36_s16 = int_to_ptr.vmem [resolvable:$true] %s35_s16 }
  0x14   :  { %p426_p9 = scmp.lt.u32.totalorder %s422_s19, %s542_s3 }
  0x16   :  { %p428_p10 = pnand %p426_p9, %p423_p8 }
  0x18   :  { %431 = shalt.err (!%p428_p10)
}
  0x19   :  { %s432_s24 = scalar_lea.vmem %s36_s16, 512  ;;  %p437_p12 = scmp.lt.s32.totalorder %s36_s16, %s36_s16 }
  0x1a   :  { %p433_p11 = scmp.ne.s32.totalorder %s36_s16, %s432_s24  ;;  %p438_p13 = scmp.lt.s32.totalorder %s432_s24, %s432_s24 }
  0x1c   :  { %p439_p0 = por %p438_p13, %p437_p12 }
  0x1e   :  { %p440_p1 = pnand %p439_p0, %p433_p11 }
  0x20   :  { %443 = shalt.err (!%p440_p1)
}
  0x21   :  { %41 = dma.hbm_to_vmem [thread:$0]  %s542_s3, 512, %s36_s16, [#allocation5], %s449_s11, %s449_s11, %s450_s12  }
  0x22   :  { %444 = dma.done.wait [#allocation3], 512  }
  0x23   :  { %445 = vsyncadd [#allocation3], 4294966784 }
  0x24   :  { %446 = dma.done.wait [#allocation5], 512  }
  0x25   :  { %447 = vsyncadd [#allocation5], 4294966784  ;;  %v452_v0 = vmov 0.0   ;;  %vm453_vm0 = vmmov 0   ;;  %v454_v1 = vmov 0.0|0.0   ;;  %vm63_vm1 = vcmask 64512  }
  0x26   :  { %350 = vmatprep.subr.mxu0 %v452_v0  ;;  %352 = vmatprep.mubr.msk.f32.mxu0 %vm453_vm0, %v452_v0  ;;  %v55_v2 = vld [vmem:[%s540_s1] sm:$0xff]  ;;  %v138_v4 = vld [vmem:[#allocation2] sm:$0xff]  ;;  %v139_v5 = vld [vmem:[#allocation2 + $0x8] sm:$0xff]  ;;  %vm149_vm2 = vcmask 261120   ;;  %v308_v26 = vlaneseq }
  0x27   :  { %377 = vmatprep.subr.bf16.mxu1 %v454_v1  ;;  %363 = vmatprep.mubr.msk.f32.mxu1 %vm453_vm0, %v452_v0  ;;  %v54_v3 = vld [vmem:[%s539_s0] sm:$0xff]  ;;  %v378_v6 = vpack.c.bf16 %v139_v5, %v138_v4  ;;  %v141_v8 = vld [vmem:[#allocation2 + $0x18] sm:$0xff]  ;;  %v224_v10 = vld [vmem:[#allocation4] sm:$0xff] }
  0x28   :  { %351 = vmatpush3.msra.mxu0 %v55_v2  ;;  %v140_v7 = vld [vmem:[#allocation2 + $0x10] sm:$0xff]  ;;  %v225_v11 = vld [vmem:[#allocation4 + $0x8] sm:$0xff]  ;;  %v227_v19 = vld [vmem:[#allocation4 + $0x18] sm:$0xff]  ;;  %v309_v27 = vand.u32 127, %v308_v26 }
  0x29   :  { %353 = vmatmul.mubr.msk.f32.vlgmr.msra.gmra.mrb[0].mxu0 %vm63_vm1, %v54_v3  ;;  %383 = vmatprep.subr.bf16.mxu0 %v454_v1  ;;  %v381_v9 = vpack.c.bf16 %v141_v8, %v140_v7  ;;  %v384_v12 = vpack.c.bf16 %v225_v11, %v224_v10  ;;  %v332_v13 = vld [vmem:[%s543_s4] ss:$0 sm:$0xff] }
  0x2a   :  { %374 = vmatprep.mubr.msk.f32.mxu0 %vm453_vm0, %v452_v0  ;;  %379 = vmatpush3.bf16.msra.mxu1 %v378_v6  ;;  %v226_v18 = vld [vmem:[#allocation4 + $0x10] sm:$0xff]  ;;  %vm310_vm3 = vcmp.lt.s32.totalorder %v309_v27, 6 }
  0x2b   :  { %380 = vmatprep.subr.bf16.mxu1 %v454_v1  ;;  %385 = vmatpush3.bf16.msra.mxu0 %v384_v12  ;;  %v387_v20 = vpack.c.bf16 %v227_v19, %v226_v18  ;;  %v334_v21 = vld [vmem:[%s544_s5] ss:$0 sm:$0xff] }
  0x2c   :  { %386 = vmatprep.subr.bf16.mxu0 %v454_v1  ;;  %v336_v28 = vld [vmem:[%s545_s6] ss:$0 sm:$0xff] }
  0x2e   :  { %382 = vmatpush3.bf16.msra.mxu1 %v381_v9 }
  0x2f   :  { %388 = vmatpush3.bf16.msra.mxu0 %v387_v20 }
  0xfc   :  { %v133_v14 = vpop.f32.mrb[0].mxu0 }
  0xfd   :  { %v134_v15 = vadd.f32 %v332_v13, %v133_v14  ;;  %v354_v16 = vpop.f32.mrb[1].mxu0 }
  0xff   :  { %v137_v17 = vmax.f32 %v134_v15, 0.0 }
 0x101   :  { %364 = vmatmul.mubr.msk.f32.vlgmr.msra.gmra.mrb[0].mxu1 %vm149_vm2, %v137_v17 }
 0x1d4   :  { %v219_v22 = vpop.f32.mrb[0].mxu1 }
 0x1d5   :  { %v220_v23 = vadd.f32 %v334_v21, %v219_v22  ;;  %v365_v24 = vpop.f32.mrb[1].mxu1 }
 0x1d7   :  { %v223_v25 = vmax.f32 %v220_v23, 0.0 }
 0x1d9   :  { %375 = vmatmul.mubr.msk.f32.vlgmr.msra.gmra.mrb[2].mxu0 %vm149_vm2, %v223_v25 }
 0x2ac   :  { %v304_v29 = vpop.f32.mrb[2].mxu0 }
 0x2ad   :  { %v305_v30 = vadd.f32 %v336_v28, %v304_v29  ;;  %v376_v31 = vpop.f32.mrb[3].mxu0 }
 0x2af   :  { %v311_v32 = vsel %vm310_vm3, %v305_v30, -1e+30 }
 0x2b0   :  { %312 = vmax.xlane.f32.xlu0 %v311_v32 }
 0x33d   :  { %v313_v33 = vpop.xlane.xlu0 %312 }
 0x33e   :  { %v314_v34 = vsub.f32 %v311_v32, %v313_v33 }
 0x340   :  { %v315_v35 = vmul.f32 1.442695, %v314_v34 }
 0x342   :  { %396 = vpow2.f32 %v315_v35 }
 0x34c   :  { %v397_v36 = vpop.eup %396 }
 0x34d   :  { %317 = vadd.xlane.f32.xlu0 %v397_v36 }
 0x3da   :  { %v318_v37 = vpop.xlane.xlu0 %317 }
 0x3db   :  { %398 = vrcp.f32 %v318_v37 }
 0x3e5   :  { %v399_v38 = vpop.eup %398 }
 0x3e6   :  { %v320_v39 = vmul.f32 %v399_v38, %v318_v37 }
 0x3e8   :  { %v321_v40 = vsub.f32 2.0, %v320_v39 }
 0x3ea   :  { %v322_v41 = vmul.f32 %v399_v38, %v321_v40 }
 0x3ec   :  { %v323_v42 = vmul.f32 %v397_v36, %v322_v41 }
 0x3ee   :  { %v324_v43 = vsel %vm310_vm3, %v323_v42, %v305_v30 }
 0x3ef   :  { %325 = vst [vmem:[%s546_s7] sm:$0xff] %v324_v43 }
 0x3f0   :  { %330 = vsyncpa [#allocation3], 1 }
 0x3f1   :  { %331 = vsyncpa [#allocation5], 1 }

</bundles_post_ra>
